<compile_context>
chip_gen: v6e
topology: v6e:2x2x1
jax: 0.10.0
libtpu: 0.0.40
codegen_flags: <defaults>
</compile_context>

<pallas_src>
import functools

import jax
import jax.numpy as jnp
from jax.experimental import pallas as pl
from jax.experimental.pallas import tpu as pltpu


# ---------------------------------------------------------------------------
# Generic tiled GEMM + bias kernel (bf16 operands on the MXU, f32 accumulate)
# ---------------------------------------------------------------------------
def _gemm_bias_kernel(x_ref, w_ref, b_ref, o_ref, acc_ref):
    @pl.when(pl.program_id(2) == 0)
    def _():
        acc_ref[...] = jnp.zeros_like(acc_ref)

    acc_ref[...] += jnp.dot(x_ref[...], w_ref[...],
                            preferred_element_type=jnp.float32)

    @pl.when(pl.program_id(2) == pl.num_programs(2) - 1)
    def _():
        o_ref[...] = (acc_ref[...] + b_ref[...]).astype(o_ref.dtype)


def _pick_tile(dim, cap, step):
    """Largest multiple of `step` that divides `dim` and is <= cap (dim % step == 0)."""
    t = min(cap, dim)
    t = max((t // step) * step, step)
    while dim % t != 0:
        t -= step
    return t


def _gemm_bias(x, w, b, *, out_dtype=jnp.float32):
    """(M,K) @ (K,N) + (1,N) with a parallel-tiled Pallas GEMM. M%8==0, K%128==0, N%128==0."""
    M, K = x.shape
    _, N = w.shape
    # Larger tile caps (perf review): amortize per-grid-step overhead, push toward HBM roofline.
    tm = _pick_tile(M, 512, 8)
    tk = _pick_tile(K, 1024, 128)
    tn = _pick_tile(N, 1024, 128)
    grid = (M // tm, N // tn, K // tk)
    return pl.pallas_call(
        _gemm_bias_kernel,
        out_shape=jax.ShapeDtypeStruct((M, N), out_dtype),
        grid_spec=pltpu.PrefetchScalarGridSpec(
            num_scalar_prefetch=0,
            grid=grid,
            in_specs=[
                pl.BlockSpec((tm, tk), lambda i, j, k: (i, k)),
                pl.BlockSpec((tk, tn), lambda i, j, k: (k, j)),
                pl.BlockSpec((1, tn), lambda i, j, k: (0, j)),
            ],
            out_specs=pl.BlockSpec((tm, tn), lambda i, j, k: (i, j)),
            scratch_shapes=[pltpu.VMEM((tm, tn), jnp.float32)],
        ),
        compiler_params=pltpu.CompilerParams(
            dimension_semantics=("parallel", "parallel", "arbitrary"),
            vmem_limit_bytes=48 * 1024 * 1024,
        ),
    )(x, w, b)


# ---------------------------------------------------------------------------
# Serial recurrence kernels.  Only h @ W_hh^T stays on the sequential path.
# seq_ref (scalar prefetch) carries the true sequence length so padded
# timesteps never update the carried state (h_final is exactly h_{S-1}).
# ---------------------------------------------------------------------------
def _rnn_recurrence_fused_kernel(seq_ref, h0_ref, xw_ref, whh_ref, wout_ref,
                                 bout_ref, y_ref, hlast_ref,
                                 h_scratch, hblk_scratch):
    blk = pl.program_id(0)
    T, B, H = xw_ref.shape
    seq_len = seq_ref[0]

    @pl.when(blk == 0)
    def _():
        h_scratch[...] = h0_ref[0]

    whh = whh_ref[...]            # (H, H) bf16, loaded once per block
    h = h_scratch[...]            # (B, H) f32 carry across grid steps

    def step(t, h_carry):
        # TODO(synk): latch W_hh once per block via pltpu.matmul_push_rhs /
        # matmul_acc_lhs / matmul_pop so the weight tile is not re-streamed
        # through the MXU for an 8-row LHS every timestep.
        z = jnp.dot(h_carry.astype(jnp.bfloat16), whh,
                    preferred_element_type=jnp.float32)
        h_new = jnp.tanh(xw_ref[t].astype(jnp.float32) + z)   # f32 add + tanh
        hblk_scratch[t] = h_new.astype(jnp.bfloat16)
        valid = (blk * T + t) < seq_len                        # mask padded timesteps
        return jnp.where(valid, h_new, h_carry)

    h = jax.lax.fori_loop(0, T, step, h, unroll=min(T, 8))
    h_scratch[...] = h
    hlast_ref[...] = h[None]

    # Fused Linear head: one lane-dense (T*B, H) @ (H, V) bf16 GEMM per time block.
    hb = hblk_scratch[...].reshape(T * B, H)
    y = jnp.dot(hb, wout_ref[...], preferred_element_type=jnp.float32) + bout_ref[...]
    y_ref[...] = y.reshape(T, B, y_ref.shape[-1]).astype(y_ref.dtype)


def _rnn_recurrence_kernel(seq_ref, h0_ref, xw_ref, whh_ref,
                           hall_ref, hlast_ref, h_scratch):
    blk = pl.program_id(0)
    T, B, H = xw_ref.shape
    seq_len = seq_ref[0]

    @pl.when(blk == 0)
    def _():
        h_scratch[...] = h0_ref[0]

    whh = whh_ref[...]
    h = h_scratch[...]

    def step(t, h_carry):
        z = jnp.dot(h_carry.astype(jnp.bfloat16), whh,
                    preferred_element_type=jnp.float32)
        h_new = jnp.tanh(xw_ref[t].astype(jnp.float32) + z)
        hall_ref[t] = h_new.astype(hall_ref.dtype)
        valid = (blk * T + t) < seq_len
        return jnp.where(valid, h_new, h_carry)

    h = jax.lax.fori_loop(0, T, step, h, unroll=min(T, 8))
    h_scratch[...] = h
    hlast_ref[...] = h[None]


# ---------------------------------------------------------------------------
# Wrapper helpers
# ---------------------------------------------------------------------------
def _round_up(n, m):
    return ((n + m - 1) // m) * m


def _pad_to(x, axis, target):
    pad = target - x.shape[axis]
    if pad <= 0:
        return x
    widths = [(0, 0)] * x.ndim
    widths[axis] = (0, pad)
    return jnp.pad(x, widths)


def _fits_fused_head(T, B_pad, H_pad, V_pad, budget_bytes=24 * 1024 * 1024):
    """Conservative VMEM estimate for fusing the Linear head into the recurrence kernel."""
    est = (
        2 * (T * B_pad * H_pad * 2)      # XW block (bf16), double-buffered
        + 2 * (H_pad * H_pad * 2)        # W_hh^T  (bf16), double-buffered
        + 2 * (H_pad * V_pad * 2)        # W_out^T (bf16), double-buffered
        + 2 * (T * B_pad * V_pad * 4)    # Y block (f32), double-buffered
        + (T * B_pad * H_pad * 2)        # per-block h scratch (bf16)
        + 5 * (B_pad * H_pad * 4)        # h0 / h_last / h_scratch
    )
    return est <= budget_bytes


# ---------------------------------------------------------------------------
# Forward wrapper
# ---------------------------------------------------------------------------
@functools.partial(jax.jit, static_argnames=("t_block",))
def rnn_model_forward(inputs, state, params, *, t_block=32):
    """Pallas implementation of RNNModel.forward(inputs, state)."""
    S, B, I = inputs.shape
    H = params["w_hh"].shape[0]          # (H, H)
    V = params["w_out"].shape[0]         # (V, H)

    # ---- TPU-friendly padded dims -------------------------------------------------
    B_pad = _round_up(B, 8)              # sublanes
    I_pad = _round_up(I, 128)            # lanes
    H_pad = _round_up(H, 128)
    V_pad = _round_up(V, 128)
    T = min(t_block, S)                  # timesteps per grid iteration
    S_pad = _round_up(S, T)

    bf16 = jnp.bfloat16

    # ---- pad operands (zero padding is exact: padded hidden lanes stay 0, padded
    # batch rows / timesteps are sliced off, and padded timesteps never update the
    # carried state thanks to the in-kernel seq-length mask).
    x_p = _pad_to(_pad_to(_pad_to(inputs, 2, I_pad), 1, B_pad), 0, S_pad)
    h0_p = _pad_to(_pad_to(state, 2, H_pad), 1, B_pad).astype(jnp.float32)

    wih_t = _pad_to(_pad_to(params["w_ih"].T, 0, I_pad), 1, H_pad).astype(bf16)
    whh_t = _pad_to(_pad_to(params["w_hh"].T, 0, H_pad), 1, H_pad).astype(bf16)
    wout_t = _pad_to(_pad_to(params["w_out"].T, 0, H_pad), 1, V_pad).astype(bf16)
    b_comb = _pad_to((params["b_ih"] + params["b_hh"]).reshape(1, H), 1, H_pad)
    b_out = _pad_to(params["b_out"].reshape(1, V), 1, V_pad)
    seq_len = jnp.array([S], dtype=jnp.int32)

    # ---- Phase 1: input projection as one big parallel bf16 GEMM (off the serial path)
    xw_flat = _gemm_bias(
        x_p.reshape(S_pad * B_pad, I_pad).astype(bf16), wih_t, b_comb,
        out_dtype=bf16)
    xw = xw_flat.reshape(S_pad, B_pad, H_pad)

    fuse_head = _fits_fused_head(T, B_pad, H_pad, V_pad)
    rec_compiler_params = pltpu.CompilerParams(
        dimension_semantics=("arbitrary",),     # sequential recurrence
        vmem_limit_bytes=48 * 1024 * 1024,
    )

    if fuse_head:
        # ---- Phase 2+3 fused: recurrence + Linear head, no h_all HBM round trip ----
        y_pad, h_last = pl.pallas_call(
            _rnn_recurrence_fused_kernel,
            out_shape=(
                jax.ShapeDtypeStruct((S_pad, B_pad, V_pad), jnp.float32),
                jax.ShapeDtypeStruct((1, B_pad, H_pad), jnp.float32),
            ),
            grid_spec=pltpu.PrefetchScalarGridSpec(
                num_scalar_prefetch=1,
                grid=(S_pad // T,),
                in_specs=[
                    pl.BlockSpec((1, B_pad, H_pad), lambda b, s: (0, 0, 0)),   # h0
                    pl.BlockSpec((T, B_pad, H_pad), lambda b, s: (b, 0, 0)),   # XW block
                    pl.BlockSpec((H_pad, H_pad), lambda b, s: (0, 0)),         # W_hh^T
                    pl.BlockSpec((H_pad, V_pad), lambda b, s: (0, 0)),         # W_out^T
                    pl.BlockSpec((1, V_pad), lambda b, s: (0, 0)),             # b_out
                ],
                out_specs=(
                    pl.BlockSpec((T, B_pad, V_pad), lambda b, s: (b, 0, 0)),   # Y block
                    pl.BlockSpec((1, B_pad, H_pad), lambda b, s: (0, 0, 0)),   # h_last
                ),
                scratch_shapes=[
                    pltpu.VMEM((B_pad, H_pad), jnp.float32),       # carried h
                    pltpu.VMEM((T, B_pad, H_pad), jnp.bfloat16),   # h block for the head GEMM
                ],
            ),
            compiler_params=rec_compiler_params,
        )(seq_len, h0_p, xw, whh_t, wout_t, b_out)
        y = y_pad[:S, :B, :V]
    else:
        # ---- Phase 2: serial recurrence only; Phase 3 as a separate parallel GEMM ----
        h_all, h_last = pl.pallas_call(
            _rnn_recurrence_kernel,
            out_shape=(
                jax.ShapeDtypeStruct((S_pad, B_pad, H_pad), jnp.bfloat16),
                jax.ShapeDtypeStruct((1, B_pad, H_pad), jnp.float32),
            ),
            grid_spec=pltpu.PrefetchScalarGridSpec(
                num_scalar_prefetch=1,
                grid=(S_pad // T,),
                in_specs=[
                    pl.BlockSpec((1, B_pad, H_pad), lambda b, s: (0, 0, 0)),
                    pl.BlockSpec((T, B_pad, H_pad), lambda b, s: (b, 0, 0)),
                    pl.BlockSpec((H_pad, H_pad), lambda b, s: (0, 0)),
                ],
                out_specs=(
                    pl.BlockSpec((T, B_pad, H_pad), lambda b, s: (b, 0, 0)),
                    pl.BlockSpec((1, B_pad, H_pad), lambda b, s: (0, 0, 0)),
                ),
                scratch_shapes=[pltpu.VMEM((B_pad, H_pad), jnp.float32)],
            ),
            compiler_params=rec_compiler_params,
        )(seq_len, h0_p, xw, whh_t)
        y_flat = _gemm_bias(h_all.reshape(S_pad * B_pad, H_pad), wout_t, b_out)
        y = y_flat.reshape(S_pad, B_pad, V_pad)[:S, :B, :V]

    h_final = h_last[:, :B, :H]
    return y, h_final


# ---------------------------------------------------------------------------
# Reference + test harness
# ---------------------------------------------------------------------------
def _reference_forward(inputs, state, params):
    """Pure-JAX f32 reference of the PyTorch forward for correctness checking."""
    def step(h, x_t):
        h_new = jnp.tanh(x_t @ params["w_ih"].T + params["b_ih"]
                         + h @ params["w_hh"].T + params["b_hh"])
        y_t = h_new @ params["w_out"].T + params["b_out"]
        return h_new, y_t

    h_last, ys = jax.lax.scan(step, state[0], inputs)
    return ys, h_last[None, ...]


def make_params(key, input_size, num_hiddens, vocab_size):
    """PyTorch-style uniform(-1/sqrt(H), 1/sqrt(H)) init."""
    ks = jax.random.split(key, 6)
    bound = 1.0 / jnp.sqrt(jnp.float32(num_hiddens))
    u = lambda k, shape: jax.random.uniform(k, shape, jnp.float32, -bound, bound)
    return {
        "w_ih": u(ks[0], (num_hiddens, input_size)),
        "w_hh": u(ks[1], (num_hiddens, num_hiddens)),
        "b_ih": u(ks[2], (num_hiddens,)),
        "b_hh": u(ks[3], (num_hiddens,)),
        "w_out": u(ks[4], (vocab_size, num_hiddens)),
        "b_out": u(ks[5], (vocab_size,)),
    }


if __name__ == "__main__":
    # Small shapes consistent with the module (LM-style: input_size == vocab_size).
    SEQ, BATCH, VOCAB, HIDDEN = 8, 2, 28, 64
    INPUT = VOCAB

    key = jax.random.PRNGKey(0)
    k_x, k_p = jax.random.split(key)

    inputs = jax.random.normal(k_x, (SEQ, BATCH, INPUT), jnp.float32)
    # begin_state: zeros of shape (num_directions * num_layers, batch, num_hiddens)
    state = jnp.zeros((1, BATCH, HIDDEN), jnp.float32)
    params = make_params(k_p, INPUT, HIDDEN, VOCAB)

    y, h_final = rnn_model_forward(inputs, state, params)
    jax.block_until_ready((y, h_final))

    y_ref, h_ref = _reference_forward(inputs, state, params)
    assert y.shape == (SEQ, BATCH, VOCAB)
    assert h_final.shape == (1, BATCH, HIDDEN)
    # bf16 MXU operands (f32 accumulation) => relax tolerance vs the f32 reference.
    assert jnp.allclose(y, y_ref, atol=2e-2, rtol=2e-2), "output mismatch vs reference"
    assert jnp.allclose(h_final, h_ref, atol=2e-2, rtol=2e-2), "state mismatch vs reference"

    print("KERNEL_OK")
</pallas_src>

<mosaic_0001>
module attributes {stable_mosaic.version = 11 : i64} {
  func.func @_gemm_bias_kernel(%arg0: i32, %arg1: i32, %arg2: i32, %arg3: memref<64x128xbf16, #tpu.memory_space<vmem>>, %arg4: memref<128x128xbf16, #tpu.memory_space<vmem>>, %arg5: memref<1x128xf32, #tpu.memory_space<vmem>>, %arg6: memref<64x128xbf16, #tpu.memory_space<vmem>>, %arg7: memref<64x128xf32, #tpu.memory_space<vmem>>) attributes {dimension_semantics = [#tpu.dimension_semantics<parallel>, #tpu.dimension_semantics<parallel>, #tpu.dimension_semantics<arbitrary>], iteration_bounds = array<i64: 1, 1, 1>, scalar_prefetch = 0 : i64, scratch_operands = 1 : i64, tpu.core_type = #tpu.core_type<tc>, window_params = [{transform_indices = @transform_0, window_bounds = array<i64: 64, 128>}, {transform_indices = @transform_1, window_bounds = array<i64: 128, 128>}, {transform_indices = @transform_2, window_bounds = array<i64: 1, 128>}, {transform_indices = @transform_3, window_bounds = array<i64: 64, 128>}]} {
    %c0_i32 = arith.constant 0 : i32
    %0 = arith.cmpi eq, %arg2, %c0_i32 : i32
    %1 = arith.extui %0 : i1 to i32
    %c0_i32_0 = arith.constant 0 : i32
    %2 = arith.cmpi ne, %1, %c0_i32_0 : i32
    scf.if %2 {
      %cst_10 = arith.constant 0.000000e+00 : f32
      %12 = vector.broadcast %cst_10 : f32 to vector<64x128xf32>
      %c0_11 = arith.constant 0 : index
      %c0_12 = arith.constant 0 : index
      %13 = vector.load %arg7[%c0_11, %c0_12] : memref<64x128xf32, #tpu.memory_space<vmem>>, vector<64x128xf32>
      tpu.vector_store %arg7[%c0_11, %c0_12], %12 {strides = array<i32>} : memref<64x128xf32, #tpu.memory_space<vmem>>, vector<64x128xf32>,
    } else {
    }
    %c0 = arith.constant 0 : index
    %c0_1 = arith.constant 0 : index
    %3 = vector.load %arg7[%c0, %c0_1] : memref<64x128xf32, #tpu.memory_space<vmem>>, vector<64x128xf32>
    %c0_2 = arith.constant 0 : index
    %c0_3 = arith.constant 0 : index
    %4 = vector.load %arg3[%c0_2, %c0_3] : memref<64x128xbf16, #tpu.memory_space<vmem>>, vector<64x128xbf16>
    %c0_4 = arith.constant 0 : index
    %c0_5 = arith.constant 0 : index
    %5 = vector.load %arg4[%c0_4, %c0_5] : memref<128x128xbf16, #tpu.memory_space<vmem>>, vector<128x128xbf16>
    %cst = arith.constant dense<0.000000e+00> : vector<64x128xf32>
    %6 = tpu.matmul %4, %5, %cst {dimension_numbers = #tpu.dot_dimension_numbers<[1], [0], [0], [1], [0, 0, 1, 1], [], []>} : vector<64x128xbf16>, vector<128x128xbf16>, vector<64x128xf32> -> vector<64x128xf32>
    %7 = arith.addf %3, %6 : vector<64x128xf32>
    %c0_6 = arith.constant 0 : index
    %c0_7 = arith.constant 0 : index
    %8 = vector.load %arg7[%c0_6, %c0_7] : memref<64x128xf32, #tpu.memory_space<vmem>>, vector<64x128xf32>
    tpu.vector_store %arg7[%c0_6, %c0_7], %7 {strides = array<i32>} : memref<64x128xf32, #tpu.memory_space<vmem>>, vector<64x128xf32>,
    %c0_i32_8 = arith.constant 0 : i32
    %9 = arith.cmpi eq, %arg2, %c0_i32_8 : i32
    %10 = arith.extui %9 : i1 to i32
    %c0_i32_9 = arith.constant 0 : i32
    %11 = arith.cmpi ne, %10, %c0_i32_9 : i32
    scf.if %11 {
      %c0_10 = arith.constant 0 : index
      %c0_11 = arith.constant 0 : index
      %12 = vector.load %arg7[%c0_10, %c0_11] : memref<64x128xf32, #tpu.memory_space<vmem>>, vector<64x128xf32>
      %c0_12 = arith.constant 0 : index
      %c0_13 = arith.constant 0 : index
      %13 = vector.load %arg5[%c0_12, %c0_13] : memref<1x128xf32, #tpu.memory_space<vmem>>, vector<1x128xf32>
      %14 = vector.broadcast %13 : vector<1x128xf32> to vector<64x128xf32>
      %15 = arith.addf %12, %14 : vector<64x128xf32>
      %16 = arith.truncf %15 : vector<64x128xf32> to vector<64x128xbf16>
      %c0_14 = arith.constant 0 : index
      %c0_15 = arith.constant 0 : index
      %17 = vector.load %arg6[%c0_14, %c0_15] : memref<64x128xbf16, #tpu.memory_space<vmem>>, vector<64x128xbf16>
      tpu.vector_store %arg6[%c0_14, %c0_15], %16 {strides = array<i32>} : memref<64x128xbf16, #tpu.memory_space<vmem>>, vector<64x128xbf16>,
    } else {
    }
    return
  }
  func.func @transform_0(%arg0: i32, %arg1: i32, %arg2: i32) -> (i32, i32) {
    %c0_i32 = arith.constant 0 : i32
    return %arg0, %arg2 : i32, i32
  }
  func.func @transform_1(%arg0: i32, %arg1: i32, %arg2: i32) -> (i32, i32) {
    %c0_i32 = arith.constant 0 : i32
    return %arg2, %arg1 : i32, i32
  }
  func.func @transform_2(%arg0: i32, %arg1: i32, %arg2: i32) -> (i32, i32) {
    %c0_i32 = arith.constant 0 : i32
    %c0_i32_0 = arith.constant 0 : i32
    return %c0_i32, %arg1 : i32, i32
  }
  func.func @transform_3(%arg0: i32, %arg1: i32, %arg2: i32) -> (i32, i32) {
    %c0_i32 = arith.constant 0 : i32
    return %arg0, %arg1 : i32, i32
  }
}

module attributes {stable_mosaic.version = 11 : i64} {
  func.func @_rnn_recurrence_fused_kernel(%arg0: i32, %arg1: memref<1xi32, #tpu.memory_space<smem>>, %arg2: memref<1x8x128xf32, #tpu.memory_space<vmem>>, %arg3: memref<8x8x128xbf16, #tpu.memory_space<vmem>>, %arg4: memref<128x128xbf16, #tpu.memory_space<vmem>>, %arg5: memref<128x128xbf16, #tpu.memory_space<vmem>>, %arg6: memref<1x128xf32, #tpu.memory_space<vmem>>, %arg7: memref<8x8x128xf32, #tpu.memory_space<vmem>>, %arg8: memref<1x8x128xf32, #tpu.memory_space<vmem>>, %arg9: memref<8x128xf32, #tpu.memory_space<vmem>>, %arg10: memref<8x8x128xbf16, #tpu.memory_space<vmem>>) attributes {dimension_semantics = [#tpu.dimension_semantics<arbitrary>], iteration_bounds = array<i64: 1>, scalar_prefetch = 1 : i64, scratch_operands = 2 : i64, tpu.core_type = #tpu.core_type<tc>, window_params = [{pipeline_mode = #tpu.pipeline_mode<synchronous>, transform_indices = @transform_0, window_bounds = array<i64: 1, 8, 128>}, {transform_indices = @transform_1, window_bounds = array<i64: 8, 8, 128>}, {pipeline_mode = #tpu.pipeline_mode<synchronous>, transform_indices = @transform_2, window_bounds = array<i64: 128, 128>}, {pipeline_mode = #tpu.pipeline_mode<synchronous>, transform_indices = @transform_3, window_bounds = array<i64: 128, 128>}, {pipeline_mode = #tpu.pipeline_mode<synchronous>, transform_indices = @transform_4, window_bounds = array<i64: 1, 128>}, {transform_indices = @transform_5, window_bounds = array<i64: 8, 8, 128>}, {pipeline_mode = #tpu.pipeline_mode<synchronous>, transform_indices = @transform_6, window_bounds = array<i64: 1, 8, 128>}]} {
    %c0 = arith.constant 0 : index
    %0 = memref.load %arg1[%c0] : memref<1xi32, #tpu.memory_space<smem>>
    %c0_i32 = arith.constant 0 : i32
    %1 = arith.cmpi eq, %arg0, %c0_i32 : i32
    %2 = arith.extui %1 : i1 to i32
    %c0_i32_0 = arith.constant 0 : i32
    %3 = arith.cmpi ne, %2, %c0_i32_0 : i32
    scf.if %3 {
      %c0_69 = arith.constant 0 : index
      %c0_70 = arith.constant 0 : index
      %c0_71 = arith.constant 0 : index
      %154 = vector.load %arg2[%c0_69, %c0_70, %c0_71] : memref<1x8x128xf32, #tpu.memory_space<vmem>>, vector<1x8x128xf32>
      %155 = vector.shape_cast %154 : vector<1x8x128xf32> to vector<8x128xf32>
      %c0_72 = arith.constant 0 : index
      %c0_73 = arith.constant 0 : index
      %156 = vector.load %arg9[%c0_72, %c0_73] : memref<8x128xf32, #tpu.memory_space<vmem>>, vector<8x128xf32>
      tpu.vector_store %arg9[%c0_72, %c0_73], %155 {strides = array<i32>} : memref<8x128xf32, #tpu.memory_space<vmem>>, vector<8x128xf32>,
    } else {
    }
    %c0_1 = arith.constant 0 : index
    %c0_2 = arith.constant 0 : index
    %4 = vector.load %arg4[%c0_1, %c0_2] : memref<128x128xbf16, #tpu.memory_space<vmem>>, vector<128x128xbf16>
    %c0_3 = arith.constant 0 : index
    %c0_4 = arith.constant 0 : index
    %5 = vector.load %arg9[%c0_3, %c0_4] : memref<8x128xf32, #tpu.memory_space<vmem>>, vector<8x128xf32>
    %c0_i32_5 = arith.constant 0 : i32
    %6 = arith.truncf %5 : vector<8x128xf32> to vector<8x128xbf16>
    %cst = arith.constant dense<0.000000e+00> : vector<8x128xf32>
    %7 = tpu.matmul %6, %4, %cst {dimension_numbers = #tpu.dot_dimension_numbers<[1], [0], [0], [1], [0, 0, 1, 1], [], []>} : vector<8x128xbf16>, vector<128x128xbf16>, vector<8x128xf32> -> vector<8x128xf32>
    %8 = arith.index_cast %c0_i32_5 : i32 to index
    %c0_6 = arith.constant 0 : index
    %c0_7 = arith.constant 0 : index
    %9 = vector.load %arg3[%8, %c0_6, %c0_7] : memref<8x8x128xbf16, #tpu.memory_space<vmem>>, vector<1x8x128xbf16>
    %10 = vector.shape_cast %9 : vector<1x8x128xbf16> to vector<8x128xbf16>
    %11 = arith.extf %10 : vector<8x128xbf16> to vector<8x128xf32>
    %12 = arith.addf %11, %7 : vector<8x128xf32>
    %13 = math.tanh %12 : vector<8x128xf32>
    %14 = arith.truncf %13 : vector<8x128xf32> to vector<8x128xbf16>
    %15 = arith.index_cast %c0_i32_5 : i32 to index
    %c0_8 = arith.constant 0 : index
    %c0_9 = arith.constant 0 : index
    %16 = vector.load %arg10[%15, %c0_8, %c0_9] : memref<8x8x128xbf16, #tpu.memory_space<vmem>>, vector<1x8x128xbf16>
    %17 = vector.shape_cast %16 : vector<1x8x128xbf16> to vector<8x128xbf16>
    %18 = vector.shape_cast %14 : vector<8x128xbf16> to vector<1x8x128xbf16>
    tpu.vector_store %arg10[%15, %c0_8, %c0_9], %18 {strides = array<i32>} : memref<8x8x128xbf16, #tpu.memory_space<vmem>>, vector<1x8x128xbf16>,
    %c8_i32 = arith.constant 8 : i32
    %19 = arith.muli %arg0, %c8_i32 : i32
    %20 = arith.addi %19, %c0_i32_5 : i32
    %21 = arith.cmpi slt, %20, %0 : i32
    %22 = arith.select %21, %13, %5 : vector<8x128xf32>
    %c1_i32 = arith.constant 1 : i32
    %23 = arith.truncf %22 : vector<8x128xf32> to vector<8x128xbf16>
    %cst_10 = arith.constant dense<0.000000e+00> : vector<8x128xf32>
    %24 = tpu.matmul %23, %4, %cst_10 {dimension_numbers = #tpu.dot_dimension_numbers<[1], [0], [0], [1], [0, 0, 1, 1], [], []>} : vector<8x128xbf16>, vector<128x128xbf16>, vector<8x128xf32> -> vector<8x128xf32>
    %25 = arith.index_cast %c1_i32 : i32 to index
    %c0_11 = arith.constant 0 : index
    %c0_12 = arith.constant 0 : index
    %26 = vector.load %arg3[%25, %c0_11, %c0_12] : memref<8x8x128xbf16, #tpu.memory_space<vmem>>, vector<1x8x128xbf16>
    %27 = vector.shape_cast %26 : vector<1x8x128xbf16> to vector<8x128xbf16>
    %28 = arith.extf %27 : vector<8x128xbf16> to vector<8x128xf32>
    %29 = arith.addf %28, %24 : vector<8x128xf32>
    %30 = math.tanh %29 : vector<8x128xf32>
    %31 = arith.truncf %30 : vector<8x128xf32> to vector<8x128xbf16>
    %32 = arith.index_cast %c1_i32 : i32 to index
    %c0_13 = arith.constant 0 : index
    %c0_14 = arith.constant 0 : index
    %33 = vector.load %arg10[%32, %c0_13, %c0_14] : memref<8x8x128xbf16, #tpu.memory_space<vmem>>, vector<1x8x128xbf16>
    %34 = vector.shape_cast %33 : vector<1x8x128xbf16> to vector<8x128xbf16>
    %35 = vector.shape_cast %31 : vector<8x128xbf16> to vector<1x8x128xbf16>
    tpu.vector_store %arg10[%32, %c0_13, %c0_14], %35 {strides = array<i32>} : memref<8x8x128xbf16, #tpu.memory_space<vmem>>, vector<1x8x128xbf16>,
    %c8_i32_15 = arith.constant 8 : i32
    %36 = arith.muli %arg0, %c8_i32_15 : i32
    %37 = arith.addi %36, %c1_i32 : i32
    %38 = arith.cmpi slt, %37, %0 : i32
    %39 = arith.select %38, %30, %22 : vector<8x128xf32>
    %c2_i32 = arith.constant 2 : i32
    %40 = arith.truncf %39 : vector<8x128xf32> to vector<8x128xbf16>
    %cst_16 = arith.constant dense<0.000000e+00> : vector<8x128xf32>
    %41 = tpu.matmul %40, %4, %cst_16 {dimension_numbers = #tpu.dot_dimension_numbers<[1], [0], [0], [1], [0, 0, 1, 1], [], []>} : vector<8x128xbf16>, vector<128x128xbf16>, vector<8x128xf32> -> vector<8x128xf32>
    %42 = arith.index_cast %c2_i32 : i32 to index
    %c0_17 = arith.constant 0 : index
    %c0_18 = arith.constant 0 : index
    %43 = vector.load %arg3[%42, %c0_17, %c0_18] : memref<8x8x128xbf16, #tpu.memory_space<vmem>>, vector<1x8x128xbf16>
    %44 = vector.shape_cast %43 : vector<1x8x128xbf16> to vector<8x128xbf16>
    %45 = arith.extf %44 : vector<8x128xbf16> to vector<8x128xf32>
    %46 = arith.addf %45, %41 : vector<8x128xf32>
    %47 = math.tanh %46 : vector<8x128xf32>
    %48 = arith.truncf %47 : vector<8x128xf32> to vector<8x128xbf16>
    %49 = arith.index_cast %c2_i32 : i32 to index
    %c0_19 = arith.constant 0 : index
    %c0_20 = arith.constant 0 : index
    %50 = vector.load %arg10[%49, %c0_19, %c0_20] : memref<8x8x128xbf16, #tpu.memory_space<vmem>>, vector<1x8x128xbf16>
    %51 = vector.shape_cast %50 : vector<1x8x128xbf16> to vector<8x128xbf16>
    %52 = vector.shape_cast %48 : vector<8x128xbf16> to vector<1x8x128xbf16>
    tpu.vector_store %arg10[%49, %c0_19, %c0_20], %52 {strides = array<i32>} : memref<8x8x128xbf16, #tpu.memory_space<vmem>>, vector<1x8x128xbf16>,
    %c8_i32_21 = arith.constant 8 : i32
    %53 = arith.muli %arg0, %c8_i32_21 : i32
    %54 = arith.addi %53, %c2_i32 : i32
    %55 = arith.cmpi slt, %54, %0 : i32
    %56 = arith.select %55, %47, %39 : vector<8x128xf32>
    %c3_i32 = arith.constant 3 : i32
    %57 = arith.truncf %56 : vector<8x128xf32> to vector<8x128xbf16>
    %cst_22 = arith.constant dense<0.000000e+00> : vector<8x128xf32>
    %58 = tpu.matmul %57, %4, %cst_22 {dimension_numbers = #tpu.dot_dimension_numbers<[1], [0], [0], [1], [0, 0, 1, 1], [], []>} : vector<8x128xbf16>, vector<128x128xbf16>, vector<8x128xf32> -> vector<8x128xf32>
    %59 = arith.index_cast %c3_i32 : i32 to index
    %c0_23 = arith.constant 0 : index
    %c0_24 = arith.constant 0 : index
    %60 = vector.load %arg3[%59, %c0_23, %c0_24] : memref<8x8x128xbf16, #tpu.memory_space<vmem>>, vector<1x8x128xbf16>
    %61 = vector.shape_cast %60 : vector<1x8x128xbf16> to vector<8x128xbf16>
    %62 = arith.extf %61 : vector<8x128xbf16> to vector<8x128xf32>
    %63 = arith.addf %62, %58 : vector<8x128xf32>
    %64 = math.tanh %63 : vector<8x128xf32>
    %65 = arith.truncf %64 : vector<8x128xf32> to vector<8x128xbf16>
    %66 = arith.index_cast %c3_i32 : i32 to index
    %c0_25 = arith.constant 0 : index
    %c0_26 = arith.constant 0 : index
    %67 = vector.load %arg10[%66, %c0_25, %c0_26] : memref<8x8x128xbf16, #tpu.memory_space<vmem>>, vector<1x8x128xbf16>
    %68 = vector.shape_cast %67 : vector<1x8x128xbf16> to vector<8x128xbf16>
    %69 = vector.shape_cast %65 : vector<8x128xbf16> to vector<1x8x128xbf16>
    tpu.vector_store %arg10[%66, %c0_25, %c0_26], %69 {strides = array<i32>} : memref<8x8x128xbf16, #tpu.memory_space<vmem>>, vector<1x8x128xbf16>,
    %c8_i32_27 = arith.constant 8 : i32
    %70 = arith.muli %arg0, %c8_i32_27 : i32
    %71 = arith.addi %70, %c3_i32 : i32
    %72 = arith.cmpi slt, %71, %0 : i32
    %73 = arith.select %72, %64, %56 : vector<8x128xf32>
    %c4_i32 = arith.constant 4 : i32
    %74 = arith.truncf %73 : vector<8x128xf32> to vector<8x128xbf16>
    %cst_28 = arith.constant dense<0.000000e+00> : vector<8x128xf32>
    %75 = tpu.matmul %74, %4, %cst_28 {dimension_numbers = #tpu.dot_dimension_numbers<[1], [0], [0], [1], [0, 0, 1, 1], [], []>} : vector<8x128xbf16>, vector<128x128xbf16>, vector<8x128xf32> -> vector<8x128xf32>
    %76 = arith.index_cast %c4_i32 : i32 to index
    %c0_29 = arith.constant 0 : index
    %c0_30 = arith.constant 0 : index
    %77 = vector.load %arg3[%76, %c0_29, %c0_30] : memref<8x8x128xbf16, #tpu.memory_space<vmem>>, vector<1x8x128xbf16>
    %78 = vector.shape_cast %77 : vector<1x8x128xbf16> to vector<8x128xbf16>
    %79 = arith.extf %78 : vector<8x128xbf16> to vector<8x128xf32>
    %80 = arith.addf %79, %75 : vector<8x128xf32>
    %81 = math.tanh %80 : vector<8x128xf32>
    %82 = arith.truncf %81 : vector<8x128xf32> to vector<8x128xbf16>
    %83 = arith.index_cast %c4_i32 : i32 to index
    %c0_31 = arith.constant 0 : index
    %c0_32 = arith.constant 0 : index
    %84 = vector.load %arg10[%83, %c0_31, %c0_32] : memref<8x8x128xbf16, #tpu.memory_space<vmem>>, vector<1x8x128xbf16>
    %85 = vector.shape_cast %84 : vector<1x8x128xbf16> to vector<8x128xbf16>
    %86 = vector.shape_cast %82 : vector<8x128xbf16> to vector<1x8x128xbf16>
    tpu.vector_store %arg10[%83, %c0_31, %c0_32], %86 {strides = array<i32>} : memref<8x8x128xbf16, #tpu.memory_space<vmem>>, vector<1x8x128xbf16>,
    %c8_i32_33 = arith.constant 8 : i32
    %87 = arith.muli %arg0, %c8_i32_33 : i32
    %88 = arith.addi %87, %c4_i32 : i32
    %89 = arith.cmpi slt, %88, %0 : i32
    %90 = arith.select %89, %81, %73 : vector<8x128xf32>
    %c5_i32 = arith.constant 5 : i32
    %91 = arith.truncf %90 : vector<8x128xf32> to vector<8x128xbf16>
    %cst_34 = arith.constant dense<0.000000e+00> : vector<8x128xf32>
    %92 = tpu.matmul %91, %4, %cst_34 {dimension_numbers = #tpu.dot_dimension_numbers<[1], [0], [0], [1], [0, 0, 1, 1], [], []>} : vector<8x128xbf16>, vector<128x128xbf16>, vector<8x128xf32> -> vector<8x128xf32>
    %93 = arith.index_cast %c5_i32 : i32 to index
    %c0_35 = arith.constant 0 : index
    %c0_36 = arith.constant 0 : index
    %94 = vector.load %arg3[%93, %c0_35, %c0_36] : memref<8x8x128xbf16, #tpu.memory_space<vmem>>, vector<1x8x128xbf16>
    %95 = vector.shape_cast %94 : vector<1x8x128xbf16> to vector<8x128xbf16>
    %96 = arith.extf %95 : vector<8x128xbf16> to vector<8x128xf32>
    %97 = arith.addf %96, %92 : vector<8x128xf32>
    %98 = math.tanh %97 : vector<8x128xf32>
    %99 = arith.truncf %98 : vector<8x128xf32> to vector<8x128xbf16>
    %100 = arith.index_cast %c5_i32 : i32 to index
    %c0_37 = arith.constant 0 : index
    %c0_38 = arith.constant 0 : index
    %101 = vector.load %arg10[%100, %c0_37, %c0_38] : memref<8x8x128xbf16, #tpu.memory_space<vmem>>, vector<1x8x128xbf16>
    %102 = vector.shape_cast %101 : vector<1x8x128xbf16> to vector<8x128xbf16>
    %103 = vector.shape_cast %99 : vector<8x128xbf16> to vector<1x8x128xbf16>
    tpu.vector_store %arg10[%100, %c0_37, %c0_38], %103 {strides = array<i32>} : memref<8x8x128xbf16, #tpu.memory_space<vmem>>, vector<1x8x128xbf16>,
    %c8_i32_39 = arith.constant 8 : i32
    %104 = arith.muli %arg0, %c8_i32_39 : i32
    %105 = arith.addi %104, %c5_i32 : i32
    %106 = arith.cmpi slt, %105, %0 : i32
    %107 = arith.select %106, %98, %90 : vector<8x128xf32>
    %c6_i32 = arith.constant 6 : i32
    %108 = arith.truncf %107 : vector<8x128xf32> to vector<8x128xbf16>
    %cst_40 = arith.constant dense<0.000000e+00> : vector<8x128xf32>
    %109 = tpu.matmul %108, %4, %cst_40 {dimension_numbers = #tpu.dot_dimension_numbers<[1], [0], [0], [1], [0, 0, 1, 1], [], []>} : vector<8x128xbf16>, vector<128x128xbf16>, vector<8x128xf32> -> vector<8x128xf32>
    %110 = arith.index_cast %c6_i32 : i32 to index
    %c0_41 = arith.constant 0 : index
    %c0_42 = arith.constant 0 : index
    %111 = vector.load %arg3[%110, %c0_41, %c0_42] : memref<8x8x128xbf16, #tpu.memory_space<vmem>>, vector<1x8x128xbf16>
    %112 = vector.shape_cast %111 : vector<1x8x128xbf16> to vector<8x128xbf16>
    %113 = arith.extf %112 : vector<8x128xbf16> to vector<8x128xf32>
    %114 = arith.addf %113, %109 : vector<8x128xf32>
    %115 = math.tanh %114 : vector<8x128xf32>
    %116 = arith.truncf %115 : vector<8x128xf32> to vector<8x128xbf16>
    %117 = arith.index_cast %c6_i32 : i32 to index
    %c0_43 = arith.constant 0 : index
    %c0_44 = arith.constant 0 : index
    %118 = vector.load %arg10[%117, %c0_43, %c0_44] : memref<8x8x128xbf16, #tpu.memory_space<vmem>>, vector<1x8x128xbf16>
    %119 = vector.shape_cast %118 : vector<1x8x128xbf16> to vector<8x128xbf16>
    %120 = vector.shape_cast %116 : vector<8x128xbf16> to vector<1x8x128xbf16>
    tpu.vector_store %arg10[%117, %c0_43, %c0_44], %120 {strides = array<i32>} : memref<8x8x128xbf16, #tpu.memory_space<vmem>>, vector<1x8x128xbf16>,
    %c8_i32_45 = arith.constant 8 : i32
    %121 = arith.muli %arg0, %c8_i32_45 : i32
    %122 = arith.addi %121, %c6_i32 : i32
    %123 = arith.cmpi slt, %122, %0 : i32
    %124 = arith.select %123, %115, %107 : vector<8x128xf32>
    %c7_i32 = arith.constant 7 : i32
    %125 = arith.truncf %124 : vector<8x128xf32> to vector<8x128xbf16>
    %cst_46 = arith.constant dense<0.000000e+00> : vector<8x128xf32>
    %126 = tpu.matmul %125, %4, %cst_46 {dimension_numbers = #tpu.dot_dimension_numbers<[1], [0], [0], [1], [0, 0, 1, 1], [], []>} : vector<8x128xbf16>, vector<128x128xbf16>, vector<8x128xf32> -> vector<8x128xf32>
    %127 = arith.index_cast %c7_i32 : i32 to index
    %c0_47 = arith.constant 0 : index
    %c0_48 = arith.constant 0 : index
    %128 = vector.load %arg3[%127, %c0_47, %c0_48] : memref<8x8x128xbf16, #tpu.memory_space<vmem>>, vector<1x8x128xbf16>
    %129 = vector.shape_cast %128 : vector<1x8x128xbf16> to vector<8x128xbf16>
    %130 = arith.extf %129 : vector<8x128xbf16> to vector<8x128xf32>
    %131 = arith.addf %130, %126 : vector<8x128xf32>
    %132 = math.tanh %131 : vector<8x128xf32>
    %133 = arith.truncf %132 : vector<8x128xf32> to vector<8x128xbf16>
    %134 = arith.index_cast %c7_i32 : i32 to index
    %c0_49 = arith.constant 0 : index
    %c0_50 = arith.constant 0 : index
    %135 = vector.load %arg10[%134, %c0_49, %c0_50] : memref<8x8x128xbf16, #tpu.memory_space<vmem>>, vector<1x8x128xbf16>
    %136 = vector.shape_cast %135 : vector<1x8x128xbf16> to vector<8x128xbf16>
    %137 = vector.shape_cast %133 : vector<8x128xbf16> to vector<1x8x128xbf16>
    tpu.vector_store %arg10[%134, %c0_49, %c0_50], %137 {strides = array<i32>} : memref<8x8x128xbf16, #tpu.memory_space<vmem>>, vector<1x8x128xbf16>,
    %c8_i32_51 = arith.constant 8 : i32
    %138 = arith.muli %arg0, %c8_i32_51 : i32
    %139 = arith.addi %138, %c7_i32 : i32
    %140 = arith.cmpi slt, %139, %0 : i32
    %141 = arith.select %140, %132, %124 : vector<8x128xf32>
    %c8_i32_52 = arith.constant 8 : i32
    %c0_53 = arith.constant 0 : index
    %c0_54 = arith.constant 0 : index
    %142 = vector.load %arg9[%c0_53, %c0_54] : memref<8x128xf32, #tpu.memory_space<vmem>>, vector<8x128xf32>
    tpu.vector_store %arg9[%c0_53, %c0_54], %141 {strides = array<i32>} : memref<8x128xf32, #tpu.memory_space<vmem>>, vector<8x128xf32>,
    %143 = vector.shape_cast %141 : vector<8x128xf32> to vector<1x8x128xf32>
    %c0_55 = arith.constant 0 : index
    %c0_56 = arith.constant 0 : index
    %c0_57 = arith.constant 0 : index
    %144 = vector.load %arg8[%c0_55, %c0_56, %c0_57] : memref<1x8x128xf32, #tpu.memory_space<vmem>>, vector<1x8x128xf32>
    tpu.vector_store %arg8[%c0_55, %c0_56, %c0_57], %143 {strides = array<i32>} : memref<1x8x128xf32, #tpu.memory_space<vmem>>, vector<1x8x128xf32>,
    %c0_58 = arith.constant 0 : index
    %c0_59 = arith.constant 0 : index
    %c0_60 = arith.constant 0 : index
    %145 = vector.load %arg10[%c0_58, %c0_59, %c0_60] : memref<8x8x128xbf16, #tpu.memory_space<vmem>>, vector<8x8x128xbf16>
    %146 = vector.shape_cast %145 : vector<8x8x128xbf16> to vector<64x128xbf16>
    %c0_61 = arith.constant 0 : index
    %c0_62 = arith.constant 0 : index
    %147 = vector.load %arg5[%c0_61, %c0_62] : memref<128x128xbf16, #tpu.memory_space<vmem>>, vector<128x128xbf16>
    %cst_63 = arith.constant dense<0.000000e+00> : vector<64x128xf32>
    %148 = tpu.matmul %146, %147, %cst_63 {dimension_numbers = #tpu.dot_dimension_numbers<[1], [0], [0], [1], [0, 0, 1, 1], [], []>} : vector<64x128xbf16>, vector<128x128xbf16>, vector<64x128xf32> -> vector<64x128xf32>
    %c0_64 = arith.constant 0 : index
    %c0_65 = arith.constant 0 : index
    %149 = vector.load %arg6[%c0_64, %c0_65] : memref<1x128xf32, #tpu.memory_space<vmem>>, vector<1x128xf32>
    %150 = vector.broadcast %149 : vector<1x128xf32> to vector<64x128xf32>
    %151 = arith.addf %148, %150 : vector<64x128xf32>
    %152 = vector.shape_cast %151 : vector<64x128xf32> to vector<8x8x128xf32>
    %c0_66 = arith.constant 0 : index
    %c0_67 = arith.constant 0 : index
    %c0_68 = arith.constant 0 : index
    %153 = vector.load %arg7[%c0_66, %c0_67, %c0_68] : memref<8x8x128xf32, #tpu.memory_space<vmem>>, vector<8x8x128xf32>
    tpu.vector_store %arg7[%c0_66, %c0_67, %c0_68], %152 {strides = array<i32>} : memref<8x8x128xf32, #tpu.memory_space<vmem>>, vector<8x8x128xf32>,
    return
  }
  func.func @transform_0(%arg0: i32, %arg1: memref<1xi32, #tpu.memory_space<smem>>) -> (i32, i32, i32) {
    %c0_i32 = arith.constant 0 : i32
    %c0_i32_0 = arith.constant 0 : i32
    %c0_i32_1 = arith.constant 0 : i32
    %c0_i32_2 = arith.constant 0 : i32
    return %c0_i32, %c0_i32_0, %c0_i32_1 : i32, i32, i32
  }
  func.func @transform_1(%arg0: i32, %arg1: memref<1xi32, #tpu.memory_space<smem>>) -> (i32, i32, i32) {
    %c0_i32 = arith.constant 0 : i32
    %c0_i32_0 = arith.constant 0 : i32
    %c0_i32_1 = arith.constant 0 : i32
    return %arg0, %c0_i32, %c0_i32_0 : i32, i32, i32
  }
  func.func @transform_2(%arg0: i32, %arg1: memref<1xi32, #tpu.memory_space<smem>>) -> (i32, i32) {
    %c0_i32 = arith.constant 0 : i32
    %c0_i32_0 = arith.constant 0 : i32
    %c0_i32_1 = arith.constant 0 : i32
    return %c0_i32, %c0_i32_0 : i32, i32
  }
  func.func @transform_3(%arg0: i32, %arg1: memref<1xi32, #tpu.memory_space<smem>>) -> (i32, i32) {
    %c0_i32 = arith.constant 0 : i32
    %c0_i32_0 = arith.constant 0 : i32
    %c0_i32_1 = arith.constant 0 : i32
    return %c0_i32, %c0_i32_0 : i32, i32
  }
  func.func @transform_4(%arg0: i32, %arg1: memref<1xi32, #tpu.memory_space<smem>>) -> (i32, i32) {
    %c0_i32 = arith.constant 0 : i32
    %c0_i32_0 = arith.constant 0 : i32
    %c0_i32_1 = arith.constant 0 : i32
    return %c0_i32, %c0_i32_0 : i32, i32
  }
  func.func @transform_5(%arg0: i32, %arg1: memref<1xi32, #tpu.memory_space<smem>>) -> (i32, i32, i32) {
    %c0_i32 = arith.constant 0 : i32
    %c0_i32_0 = arith.constant 0 : i32
    %c0_i32_1 = arith.constant 0 : i32
    return %arg0, %c0_i32, %c0_i32_0 : i32, i32, i32
  }
  func.func @transform_6(%arg0: i32, %arg1: memref<1xi32, #tpu.memory_space<smem>>) -> (i32, i32, i32) {
    %c0_i32 = arith.constant 0 : i32
    %c0_i32_0 = arith.constant 0 : i32
    %c0_i32_1 = arith.constant 0 : i32
    %c0_i32_2 = arith.constant 0 : i32
    return %c0_i32, %c0_i32_0, %c0_i32_1 : i32, i32, i32
  }
}

</mosaic_0001>

<bundles_post_ra>
// kernel: rnn_model_forward.2
= control target key start
LH: loop header
LB: loop body
LE: loop exit
PB: predicated region body
PF: predicated region fallthrough
CT: control target
= control target key end

     0   :  { %s469_s1 = inlined_call_operand.vmem [shape: bf16[128,128], index: 1, kind: input, shape index: {}]   ;;  %s470_s0 = inlined_call_operand.vmem [shape: bf16[64,128], index: 0, kind: input, shape index: {}]   ;;  %s471_s2 = inlined_call_operand.vmem [shape: f32[1,128], index: 2, kind: input, shape index: {}]   ;;  %s472_s3 = inlined_call_operand.vmem [shape: bf16[64,128], index: 3, kind: output, shape index: {}]  }
   0x1   :  { %v386_v0 = vld [vmem:[%s469_s1 + $0x38] sm:$0xff]   ;;  %v387_v1 = vld [vmem:[%s469_s1 + $0x30] sm:$0xff]   ;;  %v388_v2 = vld [vmem:[%s469_s1 + $0x28] sm:$0xff]  }
   0x2   :  { %346 = vmatprep.subr.bf16.mxu0 %v386_v0  ;;  %370 = vmatprep.subr.bf16.mxu1 %v386_v0  ;;  %v389_v3 = vld [vmem:[%s469_s1 + $0x20] sm:$0xff]   ;;  %v395_v5 = vld [vmem:[%s470_s0 + $0x10] sm:$0xff]   ;;  %v390_v6 = vld [vmem:[%s469_s1 + $0x18] sm:$0xff]  }
   0x3   :  { %347 = vmatpush3.bf16.msra.mxu0 %v386_v0  ;;  %378 = vmatpush3.bf16.msra.mxu1 %v386_v0  ;;  %v394_v4 = vld [vmem:[%s470_s0] sm:$0xff]   ;;  %v391_v7 = vld [vmem:[%s469_s1 + $0x10] sm:$0xff]   ;;  %v392_v8 = vld [vmem:[%s469_s1 + $0x8] sm:$0xff]  }
   0x4   :  { %348 = vmatprep.subr.bf16.mxu0 %v387_v1  ;;  %371 = vmatprep.subr.bf16.mxu1 %v387_v1  ;;  %v393_v9 = vld [vmem:[%s469_s1] sm:$0xff]   ;;  %v396_v10 = vld [vmem:[%s470_s0 + $0x8] sm:$0xff]   ;;  %v397_v11 = vld [vmem:[%s470_s0 + $0x18] sm:$0xff]  }
   0x5   :  { %362 = vmatprep.mubr.bf16.mxu0 %v394_v4  ;;  %366 = vmatprep.mubr.bf16.mxu1 %v395_v5  ;;  %v294_v14 = vld [vmem:[%s471_s2] ss:$0 sm:$0xff] }
   0x7   :  { %349 = vmatpush3.bf16.msra.mxu0 %v387_v1  ;;  %379 = vmatpush3.bf16.msra.mxu1 %v387_v1 }
   0x8   :  { %350 = vmatprep.subr.bf16.mxu0 %v388_v2  ;;  %372 = vmatprep.subr.bf16.mxu1 %v388_v2 }
   0xb   :  { %351 = vmatpush3.bf16.msra.mxu0 %v388_v2  ;;  %380 = vmatpush3.bf16.msra.mxu1 %v388_v2 }
   0xc   :  { %352 = vmatprep.subr.bf16.mxu0 %v389_v3  ;;  %373 = vmatprep.subr.bf16.mxu1 %v389_v3 }
   0xf   :  { %353 = vmatpush3.bf16.msra.mxu0 %v389_v3  ;;  %381 = vmatpush3.bf16.msra.mxu1 %v389_v3 }
  0x10   :  { %354 = vmatprep.subr.bf16.mxu0 %v390_v6  ;;  %374 = vmatprep.subr.bf16.mxu1 %v390_v6 }
  0x13   :  { %355 = vmatpush3.bf16.msra.mxu0 %v390_v6  ;;  %382 = vmatpush3.bf16.msra.mxu1 %v390_v6 }
  0x14   :  { %356 = vmatprep.subr.bf16.mxu0 %v391_v7  ;;  %375 = vmatprep.subr.bf16.mxu1 %v391_v7 }
  0x17   :  { %357 = vmatpush3.bf16.msra.mxu0 %v391_v7  ;;  %383 = vmatpush3.bf16.msra.mxu1 %v391_v7 }
  0x18   :  { %358 = vmatprep.subr.bf16.mxu0 %v392_v8  ;;  %376 = vmatprep.subr.bf16.mxu1 %v392_v8 }
  0x1b   :  { %359 = vmatpush3.bf16.msra.mxu0 %v392_v8  ;;  %384 = vmatpush3.bf16.msra.mxu1 %v392_v8 }
  0x1c   :  { %360 = vmatprep.subr.bf16.mxu0 %v393_v9  ;;  %377 = vmatprep.subr.bf16.mxu1 %v393_v9 }
  0x1f   :  { %361 = vmatpush3.bf16.msra.mxu0 %v393_v9  ;;  %385 = vmatpush3.bf16.msra.mxu1 %v393_v9 }
  0x22   :  { %363 = vmatmul.mubr.bf16.vlgmr.msra.gmra.mxu0 %v396_v10  ;;  %367 = vmatmul.mubr.bf16.vlgmr.msra.gmra.mxu1 %v397_v11 }
  0xe2   :  { %v364_v12 = vpop.f32.mrf.mxu0  ;;  %v368_v13 = vpop.f32.mrf.mxu1 }
  0xe3   :  { %v232_v19 = vadd.f32 %v364_v12, %v294_v14  ;;  %v236_v20 = vadd.f32 %v368_v13, %v294_v14 }
  0xe4   :  { %v165_v15 = vpop.f32.mrf.mxu0  ;;  %v181_v16 = vpop.f32.mrf.mxu1 }
  0xe5   :  { %v230_v23 = vadd.f32 %v294_v14, %v165_v15  ;;  %v234_v24 = vadd.f32 %v294_v14, %v181_v16 }
  0xe6   :  { %v365_v17 = vpop.f32.mrf.mxu0  ;;  %v369_v18 = vpop.f32.mrf.mxu1 }
  0xe7   :  { %v233_v21 = vadd.f32 %v365_v17, %v294_v14  ;;  %v237_v22 = vadd.f32 %v369_v18, %v294_v14 }
  0xe8   :  { %v168_v25 = vpop.f32.mrf.mxu0  ;;  %v184_v26 = vpop.f32.mrf.mxu1 }
  0xe9   :  { %v319_v27 = vpack.c.bf16 %v233_v21, %v232_v19  ;;  %v329_v28 = vpack.c.bf16 %v237_v22, %v236_v20  ;;  %v231_v29 = vadd.f32 %v294_v14, %v168_v25  ;;  %v235_v30 = vadd.f32 %v294_v14, %v184_v26 }
  0xeb   :  { %331 = vst [vmem:[%s472_s3 + $0x8] sm:$0xff] %v319_v27   ;;  %333 = vst [vmem:[%s472_s3 + $0x18] sm:$0xff] %v329_v28   ;;  %v314_v31 = vpack.c.bf16 %v231_v29, %v230_v23  ;;  %v324_v32 = vpack.c.bf16 %v235_v30, %v234_v24 }
  0xed   :  { %315 = vst [vmem:[%s472_s3] sm:$0xff] %v314_v31   ;;  %332 = vst [vmem:[%s472_s3 + $0x10] sm:$0xff] %v324_v32  }

// kernel: rnn_model_forward.3
= control target key start
LH: loop header
LB: loop body
LE: loop exit
PB: predicated region body
PF: predicated region fallthrough
CT: control target
= control target key end

     0   :  { %v1063_v0 = vmov 0.0   ;;  %vm1064_vm0 = vmmov 0   ;;  %s1388_s3 = inlined_call_operand.vmem [shape: bf16[128,128], index: 3, kind: input, shape index: {}]   ;;  %s1389_s1 = inlined_call_operand.vmem [shape: f32[1,8,128], index: 1, kind: input, shape index: {}]   ;;  %s1390_s2 = inlined_call_operand.vmem [shape: bf16[8,8,128], index: 2, kind: input, shape index: {}]   ;;  %s1391_s0 = inlined_call_operand.<no memory space> [shape: s32[1], index: 0, kind: input, shape index: {}]   ;;  %s1392_s4 = inlined_call_operand.vmem [shape: bf16[128,128], index: 4, kind: input, shape index: {}]   ;;  %s1393_s5 = inlined_call_operand.vmem [shape: f32[1,128], index: 5, kind: input, shape index: {}]   ;;  %s1394_s6 = inlined_call_operand.vmem [shape: f32[8,8,128], index: 6, kind: output, shape index: {0}]   ;;  %s1395_s7 = inlined_call_operand.vmem [shape: f32[1,8,128], index: 7, kind: output, shape index: {1}]  }
   0x1   :  { %841 = vmatprep.subr.bf16.mxu1 %v1063_v0  ;;  %v1109_v1 = vld [vmem:[%s1388_s3 + $0x38] sm:$0xff]   ;;  %857 = vmatprep.mubr.msk.bf16.mxu1 %vm1064_vm0, %v1063_v0  ;;  %v1120_v2 = vld [vmem:[%s1388_s3 + $0x30] sm:$0xff]   ;;  %v1129_v3 = vld [vmem:[%s1388_s3 + $0x28] sm:$0xff]   ;;  %p729_p0 = scmp.gt.s32.totalorder %s1391_s0, 0  ;;  %p731_p1 = scmp.gt.s32.totalorder %s1391_s0, 1 }
   0x2   :  { %881 = vmatprep.subr.bf16.mxu0 %v1063_v0  ;;  %897 = vmatprep.mubr.msk.bf16.mxu0 %vm1064_vm0, %v1063_v0  ;;  %v1138_v4 = vld [vmem:[%s1388_s3 + $0x20] sm:$0xff]   ;;  %v1147_v5 = vld [vmem:[%s1388_s3 + $0x18] sm:$0xff]   ;;  %v1156_v6 = vld [vmem:[%s1388_s3 + $0x10] sm:$0xff]   ;;  %p733_p2 = scmp.gt.s32.totalorder %s1391_s0, 2  ;;  %p735_p3 = scmp.gt.s32.totalorder %s1391_s0, 3 }
   0x3   :  { %842 = vmatpush3.bf16.msra.mxu1 %v1109_v1  ;;  %882 = vmatpush3.bf16.msra.mxu0 %v1109_v1  ;;  %v1165_v7 = vld [vmem:[%s1388_s3 + $0x8] sm:$0xff]   ;;  %v1174_v8 = vld [vmem:[%s1388_s3] sm:$0xff]   ;;  %s146_s21 = scalar_select %p729_p0, 1, 0 }
   0x4   :  { %843 = vmatprep.subr.bf16.mxu1 %v1063_v0  ;;  %883 = vmatprep.subr.bf16.mxu0 %v1063_v0  ;;  %v30_v9 = vld [vmem:[%s1389_s1] sm:$0xff]  ;;  %s201_s26 = scalar_select %p731_p1, 1, 0  ;;  %v734_v46 = vld [vmem:[%s1390_s2 + $0xc] sm:$0xff]  }
   0x5   :  { %v49_v10 = vpack.c.bf16 %v30_v9, %v30_v9  ;;  %v138_v11 = vld [vmem:[%s1390_s2] sm:$0xf]  ;;  %v147_v18 = vstv %s146_s21  ;;  %v730_v23 = vld [vmem:[%s1390_s2 + $0x4] sm:$0xff]   ;;  %s256_s29 = scalar_select %p733_p2, 1, 0  ;;  %v303_v47 = vunpack.c.l.bf16 %v734_v46  ;;  %v358_v58 = vunpack.c.h.bf16 %v734_v46 }
   0x6   :  { %v139_v12 = vunpack.c.l.bf16 %v138_v11  ;;  %vm148_vm1 = vcmp.eq.s32.totalorder %v147_v18, 1  ;;  %v193_v24 = vunpack.c.l.bf16 %v730_v23  ;;  %v202_v30 = vstv %s201_s26  ;;  %s311_s11 = scalar_select %p735_p3, 1, 0  ;;  %v1037_v18 = vld [vmem:[%s1392_s4 + $0x30] sm:$0xff]  }
   0x7   :  { %844 = vmatpush3.bf16.msra.mxu1 %v1120_v2  ;;  %884 = vmatpush3.bf16.msra.mxu0 %v1120_v2  ;;  %vm203_vm2 = vcmp.eq.s32.totalorder %v202_v30, 1  ;;  %v248_v35 = vunpack.c.h.bf16 %v730_v23  ;;  %v257_v41 = vstv %s256_s29  ;;  %p737_p4 = scmp.gt.s32.totalorder %s1391_s0, 4  ;;  %p739_p5 = scmp.gt.s32.totalorder %s1391_s0, 5  ;;  %v1041_v23 = vld [vmem:[%s1392_s4 + $0x10] sm:$0xff]  }
   0x8   :  { %845 = vmatprep.subr.bf16.mxu1 %v1063_v0  ;;  %885 = vmatprep.subr.bf16.mxu0 %v1063_v0  ;;  %vm258_vm3 = vcmp.eq.s32.totalorder %v257_v41, 1  ;;  %v312_v53 = vstv %s311_s11  ;;  %p741_p6 = scmp.gt.s32.totalorder %s1391_s0, 6  ;;  %p743_p7 = scmp.gt.s32.totalorder %s1391_s0, 7 }
   0x9   :  { %vm313_vm4 = vcmp.eq.s32.totalorder %v312_v53, 1  ;;  %s366_s14 = scalar_select %p737_p4, 1, 0 }
   0xa   :  { %s421_s19 = scalar_select %p739_p5, 1, 0 }
   0xb   :  { %846 = vmatpush3.bf16.msra.mxu1 %v1129_v3  ;;  %886 = vmatpush3.bf16.msra.mxu0 %v1129_v3  ;;  %s531_s26 = scalar_select %p743_p7, 1, 0 }
   0xc   :  { %847 = vmatprep.subr.bf16.mxu1 %v1063_v0  ;;  %887 = vmatprep.subr.bf16.mxu0 %v1063_v0 }
   0xf   :  { %848 = vmatpush3.bf16.msra.mxu1 %v1138_v4  ;;  %888 = vmatpush3.bf16.msra.mxu0 %v1138_v4 }
  0x10   :  { %849 = vmatprep.subr.bf16.mxu1 %v1063_v0  ;;  %889 = vmatprep.subr.bf16.mxu0 %v1063_v0 }
  0x13   :  { %850 = vmatpush3.bf16.msra.mxu1 %v1147_v5  ;;  %890 = vmatpush3.bf16.msra.mxu0 %v1147_v5 }
  0x14   :  { %851 = vmatprep.subr.bf16.mxu1 %v1063_v0  ;;  %891 = vmatprep.subr.bf16.mxu0 %v1063_v0 }
  0x17   :  { %852 = vmatpush3.bf16.msra.mxu1 %v1156_v6  ;;  %892 = vmatpush3.bf16.msra.mxu0 %v1156_v6 }
  0x18   :  { %853 = vmatprep.subr.bf16.mxu1 %v1063_v0  ;;  %893 = vmatprep.subr.bf16.mxu0 %v1063_v0 }
  0x1b   :  { %854 = vmatpush3.bf16.msra.mxu1 %v1165_v7  ;;  %894 = vmatpush3.bf16.msra.mxu0 %v1165_v7 }
  0x1c   :  { %855 = vmatprep.subr.bf16.mxu1 %v1063_v0  ;;  %895 = vmatprep.subr.bf16.mxu0 %v1063_v0 }
  0x1f   :  { %856 = vmatpush3.bf16.msra.mxu1 %v1174_v8  ;;  %896 = vmatpush3.bf16.msra.mxu0 %v1174_v8 }
  0x20   :  { %861 = vmatprep.subr.bf16.mxu1 %v1063_v0  ;;  %921 = vmatprep.subr.bf16.mxu0 %v1063_v0 }
  0x22   :  { %858 = vmatmul.mubr.bf16.vlgmr.msra.gmra.mxu1 %v49_v10 }
  0x23   :  { %862 = vmatpush3.bf16.msra.mxu1 %v1109_v1  ;;  %877 = vmatprep.mubr.msk.bf16.mxu1 %vm1064_vm0, %v1063_v0 }
  0x24   :  { %863 = vmatprep.subr.bf16.mxu1 %v1063_v0 }
  0x27   :  { %864 = vmatpush3.bf16.msra.mxu1 %v1120_v2 }
  0x28   :  { %865 = vmatprep.subr.bf16.mxu1 %v1063_v0 }
  0x2b   :  { %866 = vmatpush3.bf16.msra.mxu1 %v1129_v3 }
  0x2c   :  { %867 = vmatprep.subr.bf16.mxu1 %v1063_v0 }
  0x2f   :  { %868 = vmatpush3.bf16.msra.mxu1 %v1138_v4 }
  0x30   :  { %869 = vmatprep.subr.bf16.mxu1 %v1063_v0 }
  0x33   :  { %870 = vmatpush3.bf16.msra.mxu1 %v1147_v5 }
  0x34   :  { %871 = vmatprep.subr.bf16.mxu1 %v1063_v0 }
  0x37   :  { %872 = vmatpush3.bf16.msra.mxu1 %v1156_v6 }
  0x38   :  { %873 = vmatprep.subr.bf16.mxu1 %v1063_v0 }
  0x3b   :  { %874 = vmatpush3.bf16.msra.mxu1 %v1165_v7 }
  0x3c   :  { %875 = vmatprep.subr.bf16.mxu1 %v1063_v0 }
  0x3f   :  { %876 = vmatpush3.bf16.msra.mxu1 %v1174_v8 }
  0x40   :  { %901 = vmatprep.subr.bf16.mxu1 %v1063_v0 }
  0xe2   :  { %v132_v13 = vpop.f32.mrf.mxu1 }
  0xe3   :  { %v140_v14 = vadd.f32 %v139_v12, %v132_v13 }
  0xe4   :  { %v859_v15 = vpop.f32.mrf.mxu1 }
  0xe5   :  { %1047 = vtanh.f32 %v140_v14 }
  0xe6   :  { %v135_v16 = vpop.f32.mrf.mxu1 }
  0xe8   :  { %v860_v17 = vpop.f32.mrf.mxu1 }
  0xf2   :  { %v1048_v19 = vpop.eup %1047 }
  0xf3   :  { %v142_v20 = vpack.c.bf16 %v1048_v19, %v1048_v19  ;;  %v149_v21 = vsel %vm148_vm1, %v1048_v19, %v30_v9  ;;  %v367_v9 = vstv %s366_s14 }
  0xf4   :  { %v150_v22 = vpack.c.bf16 %v149_v21, %v149_v21  ;;  %vm368_vm5 = vcmp.eq.s32.totalorder %v367_v9, 1 }
  0xf5   :  { %143 = vst [vmem:[#allocation3] sm:$0xf] %v142_v20  ;;  %v1038_v20 = vld [vmem:[%s1392_s4 + $0x28] sm:$0xff]  }
  0xf6   :  { %878 = vmatmul.mubr.bf16.vlgmr.msra.gmra.mxu1 %v150_v22  ;;  %v1040_v22 = vld [vmem:[%s1392_s4 + $0x18] sm:$0xff]  }
  0xf7   :  { %902 = vmatpush3.bf16.msra.mxu1 %v1109_v1  ;;  %917 = vmatprep.mubr.msk.bf16.mxu1 %vm1064_vm0, %v1063_v0 }
  0xf8   :  { %903 = vmatprep.subr.bf16.mxu1 %v1063_v0 }
  0xfb   :  { %904 = vmatpush3.bf16.msra.mxu1 %v1120_v2 }
  0xfc   :  { %905 = vmatprep.subr.bf16.mxu1 %v1063_v0 }
  0xff   :  { %906 = vmatpush3.bf16.msra.mxu1 %v1129_v3 }
 0x100   :  { %907 = vmatprep.subr.bf16.mxu1 %v1063_v0 }
 0x103   :  { %908 = vmatpush3.bf16.msra.mxu1 %v1138_v4 }
 0x104   :  { %909 = vmatprep.subr.bf16.mxu1 %v1063_v0 }
 0x107   :  { %910 = vmatpush3.bf16.msra.mxu1 %v1147_v5 }
 0x108   :  { %911 = vmatprep.subr.bf16.mxu1 %v1063_v0 }
 0x10b   :  { %912 = vmatpush3.bf16.msra.mxu1 %v1156_v6 }
 0x10c   :  { %913 = vmatprep.subr.bf16.mxu1 %v1063_v0 }
 0x10f   :  { %914 = vmatpush3.bf16.msra.mxu1 %v1165_v7 }
 0x110   :  { %915 = vmatprep.subr.bf16.mxu1 %v1063_v0 }
 0x113   :  { %916 = vmatpush3.bf16.msra.mxu1 %v1174_v8 }
 0x114   :  { %941 = vmatprep.subr.bf16.mxu1 %v1063_v0 }
 0x1b6   :  { %v185_v25 = vpop.f32.mrf.mxu1 }
 0x1b7   :  { %v194_v26 = vadd.f32 %v193_v24, %v185_v25  ;;  %v1042_v24 = vld [vmem:[%s1392_s4 + $0x8] sm:$0xff]   ;;  %v1043_v25 = vld [vmem:[%s1392_s4] sm:$0xff]  }
 0x1b8   :  { %v879_v27 = vpop.f32.mrf.mxu1 }
 0x1b9   :  { %1049 = vtanh.f32 %v194_v26 }
 0x1ba   :  { %v188_v28 = vpop.f32.mrf.mxu1 }
 0x1bb   :  { %v740_v28 = vld [vmem:[%s1390_s2 + $0x18] sm:$0xf] }
 0x1bc   :  { %v880_v29 = vpop.f32.mrf.mxu1 }
 0x1bd   :  { %v468_v29 = vunpack.c.l.bf16 %v740_v28 }
 0x1c6   :  { %v1050_v31 = vpop.eup %1049 }
 0x1c7   :  { %v196_v32 = vpack.c.bf16 %v1050_v31, %v1050_v31  ;;  %v204_v33 = vsel %vm203_vm2, %v1050_v31, %v149_v21  ;;  %v1039_v21 = vld [vmem:[%s1392_s4 + $0x20] sm:$0xff]  }
 0x1c8   :  { %v205_v34 = vpack.c.bf16 %v204_v33, %v204_v33 }
 0x1c9   :  { %198 = vst [vmem:[#allocation3 + $0x4] sm:$0xf] %v196_v32 }
 0x1ca   :  { %898 = vmatmul.mubr.bf16.vlgmr.msra.gmra.mxu0 %v205_v34 }
 0x1cb   :  { %922 = vmatpush3.bf16.msra.mxu0 %v1109_v1  ;;  %937 = vmatprep.mubr.msk.bf16.mxu0 %vm1064_vm0, %v1063_v0 }
 0x1cc   :  { %923 = vmatprep.subr.bf16.mxu0 %v1063_v0 }
 0x1cf   :  { %924 = vmatpush3.bf16.msra.mxu0 %v1120_v2 }
 0x1d0   :  { %925 = vmatprep.subr.bf16.mxu0 %v1063_v0  ;;  %v1036_v19 = vld [vmem:[#allocation3] sm:$0xff]  }
 0x1d3   :  { %926 = vmatpush3.bf16.msra.mxu0 %v1129_v3 }
 0x1d4   :  { %927 = vmatprep.subr.bf16.mxu0 %v1063_v0 }
 0x1d7   :  { %928 = vmatpush3.bf16.msra.mxu0 %v1138_v4 }
 0x1d8   :  { %929 = vmatprep.subr.bf16.mxu0 %v1063_v0 }
 0x1db   :  { %930 = vmatpush3.bf16.msra.mxu0 %v1147_v5 }
 0x1dc   :  { %931 = vmatprep.subr.bf16.mxu0 %v1063_v0 }
 0x1df   :  { %932 = vmatpush3.bf16.msra.mxu0 %v1156_v6 }
 0x1e0   :  { %933 = vmatprep.subr.bf16.mxu0 %v1063_v0 }
 0x1e3   :  { %934 = vmatpush3.bf16.msra.mxu0 %v1165_v7 }
 0x1e4   :  { %935 = vmatprep.subr.bf16.mxu0 %v1063_v0 }
 0x1e7   :  { %936 = vmatpush3.bf16.msra.mxu0 %v1174_v8 }
 0x1e8   :  { %961 = vmatprep.subr.bf16.mxu0 %v1063_v0 }
 0x28a   :  { %v240_v36 = vpop.f32.mrf.mxu0 }
 0x28b   :  { %v249_v37 = vadd.f32 %v248_v35, %v240_v36 }
 0x28c   :  { %v899_v38 = vpop.f32.mrf.mxu0 }
 0x28d   :  { %1051 = vtanh.f32 %v249_v37 }
 0x28e   :  { %v243_v39 = vpop.f32.mrf.mxu0 }
 0x290   :  { %v900_v40 = vpop.f32.mrf.mxu0 }
 0x291   :  { %v744_v40 = vld [vmem:[%s1393_s5] ss:$0 sm:$0xff] }
 0x29a   :  { %v1052_v42 = vpop.eup %1051 }
 0x29b   :  { %v251_v43 = vpack.c.bf16 %v1052_v42, %v1052_v42  ;;  %v259_v44 = vsel %vm258_vm3, %v1052_v42, %v204_v33 }
 0x29c   :  { %v260_v45 = vpack.c.bf16 %v259_v44, %v259_v44 }
 0x29d   :  { %253 = vst [vmem:[#allocation3 + $0x8] sm:$0xf] %v251_v43 }
 0x29e   :  { %918 = vmatmul.mubr.bf16.vlgmr.msra.gmra.mxu1 %v260_v45 }
 0x29f   :  { %942 = vmatpush3.bf16.msra.mxu1 %v1109_v1  ;;  %957 = vmatprep.mubr.msk.bf16.mxu1 %vm1064_vm0, %v1063_v0 }
 0x2a0   :  { %943 = vmatprep.subr.bf16.mxu1 %v1063_v0 }
 0x2a3   :  { %944 = vmatpush3.bf16.msra.mxu1 %v1120_v2 }
 0x2a4   :  { %945 = vmatprep.subr.bf16.mxu1 %v1063_v0 }
 0x2a7   :  { %946 = vmatpush3.bf16.msra.mxu1 %v1129_v3 }
 0x2a8   :  { %947 = vmatprep.subr.bf16.mxu1 %v1063_v0 }
 0x2ab   :  { %948 = vmatpush3.bf16.msra.mxu1 %v1138_v4 }
 0x2ac   :  { %949 = vmatprep.subr.bf16.mxu1 %v1063_v0 }
 0x2af   :  { %950 = vmatpush3.bf16.msra.mxu1 %v1147_v5 }
 0x2b0   :  { %951 = vmatprep.subr.bf16.mxu1 %v1063_v0 }
 0x2b3   :  { %952 = vmatpush3.bf16.msra.mxu1 %v1156_v6 }
 0x2b4   :  { %953 = vmatprep.subr.bf16.mxu1 %v1063_v0 }
 0x2b7   :  { %954 = vmatpush3.bf16.msra.mxu1 %v1165_v7 }
 0x2b8   :  { %955 = vmatprep.subr.bf16.mxu1 %v1063_v0 }
 0x2bb   :  { %956 = vmatpush3.bf16.msra.mxu1 %v1174_v8 }
 0x2bc   :  { %981 = vmatprep.subr.bf16.mxu1 %v1063_v0 }
 0x35e   :  { %v295_v48 = vpop.f32.mrf.mxu1 }
 0x35f   :  { %v304_v49 = vadd.f32 %v303_v47, %v295_v48 }
 0x360   :  { %v919_v50 = vpop.f32.mrf.mxu1 }
 0x361   :  { %1053 = vtanh.f32 %v304_v49  ;;  %v742_v49 = vld [vmem:[%s1390_s2 + $0x1c] sm:$0xf] }
 0x362   :  { %v298_v51 = vpop.f32.mrf.mxu1  ;;  %v523_v50 = vunpack.c.l.bf16 %v742_v49 }
 0x364   :  { %v920_v52 = vpop.f32.mrf.mxu1 }
 0x36e   :  { %v1054_v54 = vpop.eup %1053 }
 0x36f   :  { %v306_v55 = vpack.c.bf16 %v1054_v54, %v1054_v54  ;;  %v314_v56 = vsel %vm313_vm4, %v1054_v54, %v259_v44 }
 0x370   :  { %v315_v57 = vpack.c.bf16 %v314_v56, %v314_v56 }
 0x371   :  { %308 = vst [vmem:[#allocation3 + $0xc] sm:$0xf] %v306_v55 }
 0x372   :  { %938 = vmatmul.mubr.bf16.vlgmr.msra.gmra.mxu0 %v315_v57 }
 0x373   :  { %962 = vmatpush3.bf16.msra.mxu0 %v1109_v1  ;;  %977 = vmatprep.mubr.msk.bf16.mxu0 %vm1064_vm0, %v1063_v0 }
 0x374   :  { %963 = vmatprep.subr.bf16.mxu0 %v1063_v0 }
 0x377   :  { %964 = vmatpush3.bf16.msra.mxu0 %v1120_v2 }
 0x378   :  { %965 = vmatprep.subr.bf16.mxu0 %v1063_v0  ;;  %v1044_v26 = vld [vmem:[#allocation3 + $0x8] sm:$0xff]  }
 0x37b   :  { %966 = vmatpush3.bf16.msra.mxu0 %v1129_v3 }
 0x37c   :  { %967 = vmatprep.subr.bf16.mxu0 %v1063_v0 }
 0x37f   :  { %968 = vmatpush3.bf16.msra.mxu0 %v1138_v4 }
 0x380   :  { %969 = vmatprep.subr.bf16.mxu0 %v1063_v0 }
 0x383   :  { %970 = vmatpush3.bf16.msra.mxu0 %v1147_v5 }
 0x384   :  { %971 = vmatprep.subr.bf16.mxu0 %v1063_v0 }
 0x387   :  { %972 = vmatpush3.bf16.msra.mxu0 %v1156_v6 }
 0x388   :  { %973 = vmatprep.subr.bf16.mxu0 %v1063_v0 }
 0x38b   :  { %974 = vmatpush3.bf16.msra.mxu0 %v1165_v7 }
 0x38c   :  { %975 = vmatprep.subr.bf16.mxu0 %v1063_v0 }
 0x38f   :  { %976 = vmatpush3.bf16.msra.mxu0 %v1174_v8 }
 0x432   :  { %v350_v59 = vpop.f32.mrf.mxu0 }
 0x433   :  { %v359_v60 = vadd.f32 %v358_v58, %v350_v59 }
 0x434   :  { %v939_v61 = vpop.f32.mrf.mxu0 }
 0x435   :  { %1055 = vtanh.f32 %v359_v60 }
 0x436   :  { %v353_v62 = vpop.f32.mrf.mxu0 }
 0x438   :  { %v940_v63 = vpop.f32.mrf.mxu0 }
 0x442   :  { %v1056_v10 = vpop.eup %1055 }
 0x443   :  { %v361_v11 = vpack.c.bf16 %v1056_v10, %v1056_v10  ;;  %v369_v12 = vsel %vm368_vm5, %v1056_v10, %v314_v56  ;;  %v532_v56 = vstv %s531_s26 }
 0x444   :  { %v370_v13 = vpack.c.bf16 %v369_v12, %v369_v12  ;;  %vm533_vm8 = vcmp.eq.s32.totalorder %v532_v56, 1 }
 0x445   :  { %363 = vst [vmem:[#allocation3 + $0x10] sm:$0xf] %v361_v11 }
 0x446   :  { %958 = vmatmul.mubr.bf16.vlgmr.msra.gmra.mxu1 %v370_v13 }
 0x447   :  { %982 = vmatpush3.bf16.msra.mxu1 %v1109_v1  ;;  %997 = vmatprep.mubr.msk.bf16.mxu1 %vm1064_vm0, %v1063_v0  ;;  %v1035_v1 = vld [vmem:[%s1392_s4 + $0x38] sm:$0xff]   ;;  %s476_s4 = scalar_select %p741_p6, 1, 0 }
 0x448   :  { %983 = vmatprep.subr.bf16.mxu1 %v1063_v0  ;;  %1001 = vmatprep.subr.bf16.mxu0 %v1035_v1 }
 0x449   :  { %v477_v35 = vstv %s476_s4 }
 0x44a   :  { %vm478_vm7 = vcmp.eq.s32.totalorder %v477_v35, 1 }
 0x44b   :  { %984 = vmatpush3.bf16.msra.mxu1 %v1120_v2  ;;  %v738_v2 = vld [vmem:[%s1390_s2 + $0x14] sm:$0xf] }
 0x44c   :  { %985 = vmatprep.subr.bf16.mxu1 %v1063_v0 }
 0x44f   :  { %986 = vmatpush3.bf16.msra.mxu1 %v1129_v3  ;;  %v413_v3 = vunpack.c.l.bf16 %v738_v2 }
 0x450   :  { %987 = vmatprep.subr.bf16.mxu1 %v1063_v0 }
 0x453   :  { %988 = vmatpush3.bf16.msra.mxu1 %v1138_v4 }
 0x454   :  { %989 = vmatprep.subr.bf16.mxu1 %v1063_v0 }
 0x457   :  { %990 = vmatpush3.bf16.msra.mxu1 %v1147_v5 }
 0x458   :  { %991 = vmatprep.subr.bf16.mxu1 %v1063_v0 }
 0x45b   :  { %992 = vmatpush3.bf16.msra.mxu1 %v1156_v6 }
 0x45c   :  { %993 = vmatprep.subr.bf16.mxu1 %v1063_v0 }
 0x45f   :  { %994 = vmatpush3.bf16.msra.mxu1 %v1165_v7 }
 0x460   :  { %995 = vmatprep.subr.bf16.mxu1 %v1063_v0 }
 0x463   :  { %996 = vmatpush3.bf16.msra.mxu1 %v1174_v8  ;;  %v422_v8 = vstv %s421_s19 }
 0x464   :  { %vm423_vm6 = vcmp.eq.s32.totalorder %v422_v8, 1 }
 0x506   :  { %v405_v4 = vpop.f32.mrf.mxu1 }
 0x507   :  { %v414_v5 = vadd.f32 %v413_v3, %v405_v4 }
 0x508   :  { %v959_v6 = vpop.f32.mrf.mxu1 }
 0x509   :  { %1057 = vtanh.f32 %v414_v5 }
 0x50a   :  { %v408_v0 = vpop.f32.mrf.mxu1 }
 0x50c   :  { %v960_v7 = vpop.f32.mrf.mxu1 }
 0x516   :  { %v1058_v14 = vpop.eup %1057 }
 0x517   :  { %v416_v15 = vpack.c.bf16 %v1058_v14, %v1058_v14  ;;  %v424_v16 = vsel %vm423_vm6, %v1058_v14, %v369_v12 }
 0x518   :  { %v425_v17 = vpack.c.bf16 %v424_v16, %v424_v16 }
 0x519   :  { %418 = vst [vmem:[#allocation3 + $0x14] sm:$0xf] %v416_v15 }
 0x51a   :  { %978 = vmatmul.mubr.bf16.vlgmr.msra.gmra.mxu0 %v425_v17 }
 0x51b   :  { %1002 = vmatpush3.bf16.msra.mxu0 %v1035_v1  ;;  %1017 = vmatprep.mubr.bf16.mxu0 %v1036_v19 }
 0x51c   :  { %1003 = vmatprep.subr.bf16.mxu0 %v1037_v18 }
 0x51f   :  { %1004 = vmatpush3.bf16.msra.mxu0 %v1037_v18 }
 0x520   :  { %1005 = vmatprep.subr.bf16.mxu0 %v1038_v20  ;;  %v1045_v27 = vld [vmem:[#allocation3 + $0x10] sm:$0xff]  }
 0x523   :  { %1006 = vmatpush3.bf16.msra.mxu0 %v1038_v20 }
 0x524   :  { %1007 = vmatprep.subr.bf16.mxu0 %v1039_v21 }
 0x527   :  { %1008 = vmatpush3.bf16.msra.mxu0 %v1039_v21 }
 0x528   :  { %1009 = vmatprep.subr.bf16.mxu0 %v1040_v22 }
 0x52b   :  { %1010 = vmatpush3.bf16.msra.mxu0 %v1040_v22 }
 0x52c   :  { %1011 = vmatprep.subr.bf16.mxu0 %v1041_v23 }
 0x52f   :  { %1012 = vmatpush3.bf16.msra.mxu0 %v1041_v23 }
 0x530   :  { %1013 = vmatprep.subr.bf16.mxu0 %v1042_v24 }
 0x533   :  { %1014 = vmatpush3.bf16.msra.mxu0 %v1042_v24 }
 0x534   :  { %1015 = vmatprep.subr.bf16.mxu0 %v1043_v25 }
 0x537   :  { %1016 = vmatpush3.bf16.msra.mxu0 %v1043_v25 }
 0x53a   :  { %1018 = vmatmul.mubr.bf16.vlgmr.msra.gmra.mxu0 %v1044_v26 }
 0x53b   :  { %1021 = vmatprep.mubr.bf16.mxu0 %v1045_v27 }
 0x5da   :  { %v460_v30 = vpop.f32.mrf.mxu0 }
 0x5db   :  { %v469_v31 = vadd.f32 %v468_v29, %v460_v30 }
 0x5dc   :  { %v979_v32 = vpop.f32.mrf.mxu0 }
 0x5dd   :  { %1059 = vtanh.f32 %v469_v31 }
 0x5de   :  { %v463_v33 = vpop.f32.mrf.mxu0 }
 0x5e0   :  { %v980_v34 = vpop.f32.mrf.mxu0 }
 0x5ea   :  { %v1060_v36 = vpop.eup %1059 }
 0x5eb   :  { %v471_v37 = vpack.c.bf16 %v1060_v36, %v1060_v36  ;;  %v479_v38 = vsel %vm478_vm7, %v1060_v36, %v424_v16 }
 0x5ec   :  { %v480_v39 = vpack.c.bf16 %v479_v38, %v479_v38 }
 0x5ed   :  { %473 = vst [vmem:[#allocation3 + $0x18] sm:$0xf] %v471_v37 }
 0x5ee   :  { %998 = vmatmul.mubr.bf16.vlgmr.msra.gmra.mxu1 %v480_v39 }
 0x5fa   :  { %v1019_v41 = vpop.f32.mrf.mxu0 }
 0x5fb   :  { %v683_v42 = vadd.f32 %v1019_v41, %v744_v40 }
 0x5fc   :  { %v674_v43 = vpop.f32.mrf.mxu0 }
 0x5fd   :  { %707 = vst [vmem:[%s1394_s6 + $0x10] sm:$0xff] %v683_v42  ;;  %v675_v44 = vadd.f32 %v744_v40, %v674_v43 }
 0x5fe   :  { %v1020_v45 = vpop.f32.mrf.mxu0 }
 0x5ff   :  { %705 = vst [vmem:[%s1394_s6] sm:$0xff] %v675_v44  ;;  %v686_v46 = vadd.f32 %v1020_v45, %v744_v40 }
 0x600   :  { %v677_v47 = vpop.f32.mrf.mxu0 }
 0x601   :  { %708 = vst [vmem:[%s1394_s6 + $0x18] sm:$0xff] %v686_v46  ;;  %v678_v48 = vadd.f32 %v744_v40, %v677_v47 }
 0x603   :  { %706 = vst [vmem:[%s1394_s6 + $0x8] sm:$0xff] %v678_v48 }
 0x6ae   :  { %v515_v51 = vpop.f32.mrf.mxu1 }
 0x6af   :  { %v524_v52 = vadd.f32 %v523_v50, %v515_v51 }
 0x6b0   :  { %v999_v53 = vpop.f32.mrf.mxu1 }
 0x6b1   :  { %1061 = vtanh.f32 %v524_v52 }
 0x6b2   :  { %v518_v54 = vpop.f32.mrf.mxu1 }
 0x6b4   :  { %v1000_v55 = vpop.f32.mrf.mxu1 }
 0x6be   :  { %v1062_v57 = vpop.eup %1061 }
 0x6bf   :  { %v526_v58 = vpack.c.bf16 %v1062_v57, %v1062_v57  ;;  %v534_v59 = vsel %vm533_vm8, %v1062_v57, %v479_v38 }
 0x6c0   :  { %536 = vst [vmem:[%s1395_s7] sm:$0xff] %v534_v59 }
 0x6c1   :  { %528 = vst [vmem:[#allocation3 + $0x1c] sm:$0xf] %v526_v58 }
 0x6c8   :  { %v1046_v60 = vld [vmem:[#allocation3 + $0x18] sm:$0xff]  }
 0x6c9   :  { %1022 = vmatmul.mubr.bf16.gmra.mxu0 %v1046_v60 }
 0x789   :  { %v1023_v61 = vpop.f32.mrf.mxu0 }
 0x78a   :  { %v699_v62 = vadd.f32 %v1023_v61, %v744_v40 }
 0x78b   :  { %v690_v63 = vpop.f32.mrf.mxu0 }
 0x78c   :  { %711 = vst [vmem:[%s1394_s6 + $0x30] sm:$0xff] %v699_v62  ;;  %v691_v9 = vadd.f32 %v744_v40, %v690_v63 }
 0x78d   :  { %v1024_v10 = vpop.f32.mrf.mxu0 }
 0x78e   :  { %709 = vst [vmem:[%s1394_s6 + $0x20] sm:$0xff] %v691_v9  ;;  %v702_v11 = vadd.f32 %v1024_v10, %v744_v40 }
 0x78f   :  { %v693_v12 = vpop.f32.mrf.mxu0 }
 0x790   :  { %712 = vst [vmem:[%s1394_s6 + $0x38] sm:$0xff] %v702_v11  ;;  %v694_v13 = vadd.f32 %v744_v40, %v693_v12 }
 0x792   :  { %710 = vst [vmem:[%s1394_s6 + $0x28] sm:$0xff] %v694_v13 }

</bundles_post_ra>
